<compile_context>
chip_gen: v6e
topology: v6e:2x2x1
jax: 0.10.0
libtpu: 0.0.40
codegen_flags: <defaults>
</compile_context>

<pallas_src>
import jax
import jax.numpy as jnp
from jax.experimental import pallas as pl
from jax.experimental.pallas import tpu as pltpu

LORA_ALPHA = 32
LORA_R = 4

# Tile targets (sweep per chip; these sit well under a 40 MiB VMEM budget).
TM_TARGET = 512
TN_TARGET = 512
TK_TARGET = 1024
VMEM_LIMIT_BYTES = 40 * 1024 * 1024   # headroom even on v7x (64 MiB physical)

LANE = 128       # lane alignment (last dim)
SUBLANE = 16     # sublane alignment for bf16 rows


# ----------------------------------------------------------------------------
# padding / tiling policy (shared by build-time weight packing and call-time x)
# ----------------------------------------------------------------------------
def _round_up(x, m):
    return (x + m - 1) // m * m


def _pad_dim(d, target, align):
    """Return (padded_dim, tile): padded_dim % tile == 0, tile aligned."""
    dp = _round_up(d, align)
    if dp <= target:
        return dp, dp            # single full-extent tile (still aligned)
    return _round_up(dp, target), target


def _mc_split(Mp, tm, Np, tn):
    """Guarantee >=2 tiles on a parallel axis so both v7x TensorCores get work."""
    if Mp // tm >= 2 or Np // tn >= 2:
        return tm, tn
    if tn >= 256 and tn % 256 == 0:
        return tm, tn // 2
    if tm >= 32 and tm % 32 == 0:
        return tm // 2, tn
    return tm, tn


def _prep_x(x2d, K, Kp):
    """Cast to bf16 and pad x to (Mp, Kp); no-op if already padded (chained)."""
    R, C = x2d.shape
    Mp, tm = _pad_dim(R, TM_TARGET, SUBLANE)
    x = x2d.astype(jnp.bfloat16)
    if C != Kp or R != Mp:
        if C != Kp and C > K:          # padded for a different projection
            x = x[:, :K]
        x = jnp.pad(x, ((0, Mp - R), (0, Kp - x.shape[1])))
    return x, Mp, tm


# ----------------------------------------------------------------------------
# Pallas kernel 1: linear + bias (LoRA pre-merged into W)
#   y = x @ W + b ; f32 VMEM accumulator, bias-initialised, bf16 output
# ----------------------------------------------------------------------------
def _linear_kernel(x_ref, w_ref, b_ref, o_ref, acc_ref):
    k = pl.program_id(2)

    @pl.when(k == 0)
    def _():
        acc_ref[...] = jnp.zeros_like(acc_ref) + b_ref[...]      # bias init

    acc_ref[...] += jnp.dot(x_ref[...], w_ref[...],
                            preferred_element_type=jnp.float32)

    @pl.when(k == pl.num_programs(2) - 1)
    def _():
        o_ref[...] = acc_ref[...].astype(o_ref.dtype)


def linear_fwd(x2d, p):
    """x2d: (M, K) or already-padded (Mp, Kp) bf16 slab.  Returns padded
    (Mp, Np) bf16; caller slices [:M, :N] when logical shape is needed."""
    K, Kp, Np, tk, tn = p["K"], p["Kp"], p["Np"], p["tk"], p["tn"]
    x, Mp, tm = _prep_x(x2d, K, Kp)
    tm, tn = _mc_split(Mp, tm, Np, tn)
    grid = (Mp // tm, Np // tn, Kp // tk)

    return pl.pallas_call(
        _linear_kernel,
        out_shape=jax.ShapeDtypeStruct((Mp, Np), jnp.bfloat16),
        grid_spec=pltpu.PrefetchScalarGridSpec(
            num_scalar_prefetch=0,
            grid=grid,
            in_specs=[
                pl.BlockSpec((tm, tk), lambda i, j, k: (i, k)),   # x  (bf16)
                pl.BlockSpec((tk, tn), lambda i, j, k: (k, j)),   # W  (bf16, prepacked)
                pl.BlockSpec((1, tn), lambda i, j, k: (0, j)),    # bias (f32, prepacked)
            ],
            out_specs=pl.BlockSpec((tm, tn), lambda i, j, k: (i, j)),
            scratch_shapes=[pltpu.VMEM((tm, tn), jnp.float32)],
        ),
        compiler_params=pltpu.CompilerParams(
            dimension_semantics=("parallel", "parallel", "arbitrary"),
            vmem_limit_bytes=VMEM_LIMIT_BYTES,
        ),
    )(x, p["w"], p["b"])


# ----------------------------------------------------------------------------
# Pallas kernel 2: fused gate/up projection + SiLU(gate)*up epilogue
# ----------------------------------------------------------------------------
def _swiglu_kernel(x_ref, wg_ref, wu_ref, bg_ref, bu_ref,
                   o_ref, accg_ref, accu_ref):
    k = pl.program_id(2)

    @pl.when(k == 0)
    def _():
        accg_ref[...] = jnp.zeros_like(accg_ref) + bg_ref[...]
        accu_ref[...] = jnp.zeros_like(accu_ref) + bu_ref[...]

    x = x_ref[...]
    accg_ref[...] += jnp.dot(x, wg_ref[...], preferred_element_type=jnp.float32)
    accu_ref[...] += jnp.dot(x, wu_ref[...], preferred_element_type=jnp.float32)

    @pl.when(k == pl.num_programs(2) - 1)
    def _():
        o_ref[...] = (jax.nn.silu(accg_ref[...]) * accu_ref[...]).astype(o_ref.dtype)


def swiglu_fwd(x2d, pg, pu):
    """silu(x@Wg + bg) * (x@Wu + bu).  Returns the padded (Mp, Np) bf16 slab
    which feeds the down projection directly (no slice / re-pad)."""
    K, Kp, Np, tk, tn = pg["K"], pg["Kp"], pg["Np"], pg["tk"], pg["tn"]
    x, Mp, tm = _prep_x(x2d, K, Kp)
    tm, tn = _mc_split(Mp, tm, Np, tn)
    grid = (Mp // tm, Np // tn, Kp // tk)

    return pl.pallas_call(
        _swiglu_kernel,
        out_shape=jax.ShapeDtypeStruct((Mp, Np), jnp.bfloat16),
        grid_spec=pltpu.PrefetchScalarGridSpec(
            num_scalar_prefetch=0,
            grid=grid,
            in_specs=[
                pl.BlockSpec((tm, tk), lambda i, j, k: (i, k)),   # x
                pl.BlockSpec((tk, tn), lambda i, j, k: (k, j)),   # W_gate
                pl.BlockSpec((tk, tn), lambda i, j, k: (k, j)),   # W_up
                pl.BlockSpec((1, tn), lambda i, j, k: (0, j)),    # b_gate
                pl.BlockSpec((1, tn), lambda i, j, k: (0, j)),    # b_up
            ],
            out_specs=pl.BlockSpec((tm, tn), lambda i, j, k: (i, j)),
            scratch_shapes=[pltpu.VMEM((tm, tn), jnp.float32),
                            pltpu.VMEM((tm, tn), jnp.float32)],
        ),
        compiler_params=pltpu.CompilerParams(
            dimension_semantics=("parallel", "parallel", "arbitrary"),
            vmem_limit_bytes=VMEM_LIMIT_BYTES,
        ),
    )(x, pg["w"], pu["w"], pg["b"], pu["b"])


# ----------------------------------------------------------------------------
# Parameter construction: LoRA merge + one-time pad/cast ("packing")
# ----------------------------------------------------------------------------
def make_lora_linear_params(key, in_dim, out_dim, rank=LORA_R):
    kw, kb, ka = jax.random.split(key, 3)
    w = jax.random.normal(kw, (in_dim, out_dim), jnp.float32) / jnp.sqrt(jnp.float32(in_dim))
    b = jax.random.normal(kb, (out_dim,), jnp.float32) * 0.02
    std = 1.0 / jnp.sqrt(jnp.float32(rank))
    A = (jax.random.normal(ka, (in_dim, rank), jnp.float32) * std).astype(jnp.bfloat16)
    B = jnp.zeros((rank, out_dim), jnp.bfloat16)   # B starts at zero, as in LoRALayer
    return dict(w=w, b=b, A=A, B=B)


def _merge_lora(p, alpha=LORA_ALPHA):
    # W_eff = W + alpha * A @ B  (exact for inference; rank-4 matmul done once)
    w_eff = p["w"] + alpha * (p["A"].astype(jnp.float32) @ p["B"].astype(jnp.float32))
    return w_eff, p["b"]


def _pack(w_eff, b):
    """Pad/cast once at build time: W -> (Kp, Np) bf16, b -> (1, Np) f32."""
    K, N = w_eff.shape
    Kp, tk = _pad_dim(K, TK_TARGET, LANE)
    Np, tn = _pad_dim(N, TN_TARGET, LANE)
    wp = jnp.pad(w_eff, ((0, Kp - K), (0, Np - N))).astype(jnp.bfloat16)
    bp = jnp.pad(b.reshape(1, N).astype(jnp.float32), ((0, 0), (0, Np - N)))
    return dict(w=wp, b=bp, K=K, N=N, Kp=Kp, Np=Np, tk=tk, tn=tn)


def _finalize(p, alpha=LORA_ALPHA):
    return _pack(*_merge_lora(p, alpha))


def _fuse(ps, alpha=LORA_ALPHA):
    """Concatenate several LoRA-linears along N into one fused projection."""
    merged = [_merge_lora(p, alpha) for p in ps]
    w = jnp.concatenate([m[0] for m in merged], axis=1)
    b = jnp.concatenate([m[1] for m in merged], axis=0)
    return _pack(w, b)


def make_model_params(key, hidden, n_layers, n_heads, mlp_dim, n_latents):
    keys = jax.random.split(key, n_layers * 8 + 8)
    ki = iter(keys)
    layers = []
    for _ in range(n_layers):
        q = make_lora_linear_params(next(ki), hidden, hidden)
        k = make_lora_linear_params(next(ki), hidden, hidden)
        v = make_lora_linear_params(next(ki), hidden, hidden)
        o = make_lora_linear_params(next(ki), hidden, hidden)
        gate = make_lora_linear_params(next(ki), hidden, mlp_dim)
        up = make_lora_linear_params(next(ki), hidden, mlp_dim)
        down = make_lora_linear_params(next(ki), mlp_dim, hidden)
        layers.append(dict(
            qkv=_fuse([q, k, v]),            # fused q/k/v projection
            o=_finalize(o),
            gate=_finalize(gate),
            up=_finalize(up),
            down=_finalize(down),
        ))
    cross = dict(
        to_q=_finalize(make_lora_linear_params(next(ki), hidden, hidden)),
        to_kv=_finalize(make_lora_linear_params(next(ki), hidden, 2 * hidden)),
        to_out=_finalize(make_lora_linear_params(next(ki), hidden, hidden)),
        latents=jax.random.normal(next(ki), (n_latents, hidden), jnp.float32) * 0.02,
    )
    return dict(layers=layers, cross=cross, n_heads=n_heads, hidden=hidden)


# ----------------------------------------------------------------------------
# Forward pass (bf16 residual stream; all projections via the Pallas kernels)
# ----------------------------------------------------------------------------
def rms_norm(x, eps=1e-6):
    xf = x.astype(jnp.float32)
    var = jnp.mean(xf * xf, axis=-1, keepdims=True)
    return (xf * jax.lax.rsqrt(var + eps)).astype(jnp.bfloat16)


def mha(q, k, v, n_heads):
    # q: (B, Sq, H) bf16, k/v: (B, Sk, H) bf16; softmax in f32.
    Bq, Sq, H = q.shape
    Sk = k.shape[1]
    hd = H // n_heads
    qh = q.reshape(Bq, Sq, n_heads, hd).transpose(0, 2, 1, 3)
    kh = k.reshape(Bq, Sk, n_heads, hd).transpose(0, 2, 1, 3)
    vh = v.reshape(Bq, Sk, n_heads, hd).transpose(0, 2, 1, 3)
    scores = jnp.einsum("bhqd,bhkd->bhqk", qh, kh,
                        preferred_element_type=jnp.float32) / jnp.sqrt(jnp.float32(hd))
    attn = jax.nn.softmax(scores, axis=-1).astype(v.dtype)
    out = jnp.einsum("bhqk,bhkd->bhqd", attn, vh,
                     preferred_element_type=jnp.float32)
    return out.transpose(0, 2, 1, 3).reshape(Bq, Sq, H).astype(jnp.bfloat16)


def distilled_model_forward(params, x):
    """x: (B, S, H) token embeddings (embedding lookup is out of scope)."""
    B, S, H = x.shape
    M = B * S
    n_heads = params["n_heads"]
    h = x.astype(jnp.bfloat16)                       # bf16 residual stream

    for lp in params["layers"]:
        # --- self-attention: one fused q/k/v Pallas projection ---
        hn2d = rms_norm(h).reshape(M, H)
        qkv = linear_fwd(hn2d, lp["qkv"])[:M, :3 * H]
        q, k, v = jnp.split(qkv, 3, axis=-1)
        attn = mha(q.reshape(B, S, H), k.reshape(B, S, H), v.reshape(B, S, H),
                   n_heads)
        attn = linear_fwd(attn.reshape(M, H), lp["o"])[:M, :H]
        h = h + attn.reshape(B, S, H)

        # --- MLP: fused gate/up + SiLU*mul, padded slab chained into down ---
        hn2d = rms_norm(h).reshape(M, H)
        mlp_h = swiglu_fwd(hn2d, lp["gate"], lp["up"])    # (Mp, MLPp) bf16
        mlp = linear_fwd(mlp_h, lp["down"])[:M, :H]       # consumes padded slab
        h = h + mlp.reshape(B, S, H)

    # --- latent cross-attention block (to_q / to_kv / to_out) ---
    cp = params["cross"]
    latents = cp["latents"]
    L = latents.shape[0]
    hn2d = rms_norm(h).reshape(M, H)
    q = linear_fwd(hn2d, cp["to_q"])[:M, :H].reshape(B, S, H)
    kv = linear_fwd(latents, cp["to_kv"])[:L, :2 * H]
    k_lat, v_lat = jnp.split(kv, 2, axis=-1)
    k_lat = jnp.broadcast_to(k_lat[None], (B, L, H))
    v_lat = jnp.broadcast_to(v_lat[None], (B, L, H))
    ca = mha(q, k_lat, v_lat, n_heads)
    ca = linear_fwd(ca.reshape(M, H), cp["to_out"])[:M, :H]
    h = h + ca.reshape(B, S, H)

    # mean pool over sequence -> embedding output of encode()
    return jnp.mean(h.astype(jnp.float32), axis=1)        # (B, H) f32


# ----------------------------------------------------------------------------
if __name__ == "__main__":
    BATCH, SEQ, HIDDEN = 2, 8, 32
    N_LAYERS, N_HEADS, MLP_DIM, N_LATENTS = 2, 4, 64, 8

    root = jax.random.PRNGKey(0)
    k_params, k_x = jax.random.split(root)
    params = make_model_params(k_params, HIDDEN, N_LAYERS, N_HEADS, MLP_DIM,
                               N_LATENTS)
    x = jax.random.normal(k_x, (BATCH, SEQ, HIDDEN), jnp.float32)

    fwd = jax.jit(lambda inp: distilled_model_forward(params, inp))
    out = jax.block_until_ready(fwd(x))
    assert out.shape == (BATCH, HIDDEN) and out.dtype == jnp.float32
    print("KERNEL_OK")
</pallas_src>

<mosaic_0001>
module attributes {stable_mosaic.version = 11 : i64} {
  func.func @_linear_kernel(%arg0: i32, %arg1: i32, %arg2: i32, %arg3: memref<16x128xbf16, #tpu.memory_space<vmem>>, %arg4: memref<128x128xbf16, #tpu.memory_space<vmem>>, %arg5: memref<1x128xf32, #tpu.memory_space<vmem>>, %arg6: memref<16x128xbf16, #tpu.memory_space<vmem>>, %arg7: memref<16x128xf32, #tpu.memory_space<vmem>>) attributes {dimension_semantics = [#tpu.dimension_semantics<parallel>, #tpu.dimension_semantics<parallel>, #tpu.dimension_semantics<arbitrary>], iteration_bounds = array<i64: 1, 1, 1>, scalar_prefetch = 0 : i64, scratch_operands = 1 : i64, tpu.core_type = #tpu.core_type<tc>, window_params = [{transform_indices = @transform_0, window_bounds = array<i64: 16, 128>}, {transform_indices = @transform_1, window_bounds = array<i64: 128, 128>}, {transform_indices = @transform_2, window_bounds = array<i64: 1, 128>}, {transform_indices = @transform_3, window_bounds = array<i64: 16, 128>}]} {
    %c0_i32 = arith.constant 0 : i32
    %0 = arith.cmpi eq, %arg2, %c0_i32 : i32
    %1 = arith.extui %0 : i1 to i32
    %c0_i32_0 = arith.constant 0 : i32
    %2 = arith.cmpi ne, %1, %c0_i32_0 : i32
    scf.if %2 {
      %cst_10 = arith.constant 0.000000e+00 : f32
      %12 = vector.broadcast %cst_10 : f32 to vector<16x128xf32>
      %c0_11 = arith.constant 0 : index
      %c0_12 = arith.constant 0 : index
      %13 = vector.load %arg5[%c0_11, %c0_12] : memref<1x128xf32, #tpu.memory_space<vmem>>, vector<1x128xf32>
      %14 = vector.broadcast %13 : vector<1x128xf32> to vector<16x128xf32>
      %15 = arith.addf %12, %14 : vector<16x128xf32>
      %c0_13 = arith.constant 0 : index
      %c0_14 = arith.constant 0 : index
      %16 = vector.load %arg7[%c0_13, %c0_14] : memref<16x128xf32, #tpu.memory_space<vmem>>, vector<16x128xf32>
      tpu.vector_store %arg7[%c0_13, %c0_14], %15 {strides = array<i32>} : memref<16x128xf32, #tpu.memory_space<vmem>>, vector<16x128xf32>,
    } else {
    }
    %c0 = arith.constant 0 : index
    %c0_1 = arith.constant 0 : index
    %3 = vector.load %arg7[%c0, %c0_1] : memref<16x128xf32, #tpu.memory_space<vmem>>, vector<16x128xf32>
    %c0_2 = arith.constant 0 : index
    %c0_3 = arith.constant 0 : index
    %4 = vector.load %arg3[%c0_2, %c0_3] : memref<16x128xbf16, #tpu.memory_space<vmem>>, vector<16x128xbf16>
    %c0_4 = arith.constant 0 : index
    %c0_5 = arith.constant 0 : index
    %5 = vector.load %arg4[%c0_4, %c0_5] : memref<128x128xbf16, #tpu.memory_space<vmem>>, vector<128x128xbf16>
    %cst = arith.constant dense<0.000000e+00> : vector<16x128xf32>
    %6 = tpu.matmul %4, %5, %cst {dimension_numbers = #tpu.dot_dimension_numbers<[1], [0], [0], [1], [0, 0, 1, 1], [], []>} : vector<16x128xbf16>, vector<128x128xbf16>, vector<16x128xf32> -> vector<16x128xf32>
    %7 = arith.addf %3, %6 : vector<16x128xf32>
    %c0_6 = arith.constant 0 : index
    %c0_7 = arith.constant 0 : index
    %8 = vector.load %arg7[%c0_6, %c0_7] : memref<16x128xf32, #tpu.memory_space<vmem>>, vector<16x128xf32>
    tpu.vector_store %arg7[%c0_6, %c0_7], %7 {strides = array<i32>} : memref<16x128xf32, #tpu.memory_space<vmem>>, vector<16x128xf32>,
    %c0_i32_8 = arith.constant 0 : i32
    %9 = arith.cmpi eq, %arg2, %c0_i32_8 : i32
    %10 = arith.extui %9 : i1 to i32
    %c0_i32_9 = arith.constant 0 : i32
    %11 = arith.cmpi ne, %10, %c0_i32_9 : i32
    scf.if %11 {
      %c0_10 = arith.constant 0 : index
      %c0_11 = arith.constant 0 : index
      %12 = vector.load %arg7[%c0_10, %c0_11] : memref<16x128xf32, #tpu.memory_space<vmem>>, vector<16x128xf32>
      %13 = arith.truncf %12 : vector<16x128xf32> to vector<16x128xbf16>
      %c0_12 = arith.constant 0 : index
      %c0_13 = arith.constant 0 : index
      %14 = vector.load %arg6[%c0_12, %c0_13] : memref<16x128xbf16, #tpu.memory_space<vmem>>, vector<16x128xbf16>
      tpu.vector_store %arg6[%c0_12, %c0_13], %13 {strides = array<i32>} : memref<16x128xbf16, #tpu.memory_space<vmem>>, vector<16x128xbf16>,
    } else {
    }
    return
  }
  func.func @transform_0(%arg0: i32, %arg1: i32, %arg2: i32) -> (i32, i32) {
    %c0_i32 = arith.constant 0 : i32
    return %arg0, %arg2 : i32, i32
  }
  func.func @transform_1(%arg0: i32, %arg1: i32, %arg2: i32) -> (i32, i32) {
    %c0_i32 = arith.constant 0 : i32
    return %arg2, %arg1 : i32, i32
  }
  func.func @transform_2(%arg0: i32, %arg1: i32, %arg2: i32) -> (i32, i32) {
    %c0_i32 = arith.constant 0 : i32
    %c0_i32_0 = arith.constant 0 : i32
    return %c0_i32, %arg1 : i32, i32
  }
  func.func @transform_3(%arg0: i32, %arg1: i32, %arg2: i32) -> (i32, i32) {
    %c0_i32 = arith.constant 0 : i32
    return %arg0, %arg1 : i32, i32
  }
}

module attributes {stable_mosaic.version = 11 : i64} {
  func.func @_linear_kernel(%arg0: i32, %arg1: i32, %arg2: i32, %arg3: memref<16x128xbf16, #tpu.memory_space<vmem>>, %arg4: memref<128x128xbf16, #tpu.memory_space<vmem>>, %arg5: memref<1x128xf32, #tpu.memory_space<vmem>>, %arg6: memref<16x128xbf16, #tpu.memory_space<vmem>>, %arg7: memref<16x128xf32, #tpu.memory_space<vmem>>) attributes {dimension_semantics = [#tpu.dimension_semantics<parallel>, #tpu.dimension_semantics<parallel>, #tpu.dimension_semantics<arbitrary>], iteration_bounds = array<i64: 1, 1, 1>, scalar_prefetch = 0 : i64, scratch_operands = 1 : i64, tpu.core_type = #tpu.core_type<tc>, window_params = [{transform_indices = @transform_0, window_bounds = array<i64: 16, 128>}, {transform_indices = @transform_1, window_bounds = array<i64: 128, 128>}, {transform_indices = @transform_2, window_bounds = array<i64: 1, 128>}, {transform_indices = @transform_3, window_bounds = array<i64: 16, 128>}]} {
    %c0_i32 = arith.constant 0 : i32
    %0 = arith.cmpi eq, %arg2, %c0_i32 : i32
    %1 = arith.extui %0 : i1 to i32
    %c0_i32_0 = arith.constant 0 : i32
    %2 = arith.cmpi ne, %1, %c0_i32_0 : i32
    scf.if %2 {
      %cst_10 = arith.constant 0.000000e+00 : f32
      %12 = vector.broadcast %cst_10 : f32 to vector<16x128xf32>
      %c0_11 = arith.constant 0 : index
      %c0_12 = arith.constant 0 : index
      %13 = vector.load %arg5[%c0_11, %c0_12] : memref<1x128xf32, #tpu.memory_space<vmem>>, vector<1x128xf32>
      %14 = vector.broadcast %13 : vector<1x128xf32> to vector<16x128xf32>
      %15 = arith.addf %12, %14 : vector<16x128xf32>
      %c0_13 = arith.constant 0 : index
      %c0_14 = arith.constant 0 : index
      %16 = vector.load %arg7[%c0_13, %c0_14] : memref<16x128xf32, #tpu.memory_space<vmem>>, vector<16x128xf32>
      tpu.vector_store %arg7[%c0_13, %c0_14], %15 {strides = array<i32>} : memref<16x128xf32, #tpu.memory_space<vmem>>, vector<16x128xf32>,
    } else {
    }
    %c0 = arith.constant 0 : index
    %c0_1 = arith.constant 0 : index
    %3 = vector.load %arg7[%c0, %c0_1] : memref<16x128xf32, #tpu.memory_space<vmem>>, vector<16x128xf32>
    %c0_2 = arith.constant 0 : index
    %c0_3 = arith.constant 0 : index
    %4 = vector.load %arg3[%c0_2, %c0_3] : memref<16x128xbf16, #tpu.memory_space<vmem>>, vector<16x128xbf16>
    %c0_4 = arith.constant 0 : index
    %c0_5 = arith.constant 0 : index
    %5 = vector.load %arg4[%c0_4, %c0_5] : memref<128x128xbf16, #tpu.memory_space<vmem>>, vector<128x128xbf16>
    %cst = arith.constant dense<0.000000e+00> : vector<16x128xf32>
    %6 = tpu.matmul %4, %5, %cst {dimension_numbers = #tpu.dot_dimension_numbers<[1], [0], [0], [1], [0, 0, 1, 1], [], []>} : vector<16x128xbf16>, vector<128x128xbf16>, vector<16x128xf32> -> vector<16x128xf32>
    %7 = arith.addf %3, %6 : vector<16x128xf32>
    %c0_6 = arith.constant 0 : index
    %c0_7 = arith.constant 0 : index
    %8 = vector.load %arg7[%c0_6, %c0_7] : memref<16x128xf32, #tpu.memory_space<vmem>>, vector<16x128xf32>
    tpu.vector_store %arg7[%c0_6, %c0_7], %7 {strides = array<i32>} : memref<16x128xf32, #tpu.memory_space<vmem>>, vector<16x128xf32>,
    %c0_i32_8 = arith.constant 0 : i32
    %9 = arith.cmpi eq, %arg2, %c0_i32_8 : i32
    %10 = arith.extui %9 : i1 to i32
    %c0_i32_9 = arith.constant 0 : i32
    %11 = arith.cmpi ne, %10, %c0_i32_9 : i32
    scf.if %11 {
      %c0_10 = arith.constant 0 : index
      %c0_11 = arith.constant 0 : index
      %12 = vector.load %arg7[%c0_10, %c0_11] : memref<16x128xf32, #tpu.memory_space<vmem>>, vector<16x128xf32>
      %13 = arith.truncf %12 : vector<16x128xf32> to vector<16x128xbf16>
      %c0_12 = arith.constant 0 : index
      %c0_13 = arith.constant 0 : index
      %14 = vector.load %arg6[%c0_12, %c0_13] : memref<16x128xbf16, #tpu.memory_space<vmem>>, vector<16x128xbf16>
      tpu.vector_store %arg6[%c0_12, %c0_13], %13 {strides = array<i32>} : memref<16x128xbf16, #tpu.memory_space<vmem>>, vector<16x128xbf16>,
    } else {
    }
    return
  }
  func.func @transform_0(%arg0: i32, %arg1: i32, %arg2: i32) -> (i32, i32) {
    %c0_i32 = arith.constant 0 : i32
    return %arg0, %arg2 : i32, i32
  }
  func.func @transform_1(%arg0: i32, %arg1: i32, %arg2: i32) -> (i32, i32) {
    %c0_i32 = arith.constant 0 : i32
    return %arg2, %arg1 : i32, i32
  }
  func.func @transform_2(%arg0: i32, %arg1: i32, %arg2: i32) -> (i32, i32) {
    %c0_i32 = arith.constant 0 : i32
    %c0_i32_0 = arith.constant 0 : i32
    return %c0_i32, %arg1 : i32, i32
  }
  func.func @transform_3(%arg0: i32, %arg1: i32, %arg2: i32) -> (i32, i32) {
    %c0_i32 = arith.constant 0 : i32
    return %arg0, %arg1 : i32, i32
  }
}

module attributes {stable_mosaic.version = 11 : i64} {
  func.func @_swiglu_kernel(%arg0: i32, %arg1: i32, %arg2: i32, %arg3: memref<16x128xbf16, #tpu.memory_space<vmem>>, %arg4: memref<128x128xbf16, #tpu.memory_space<vmem>>, %arg5: memref<128x128xbf16, #tpu.memory_space<vmem>>, %arg6: memref<1x128xf32, #tpu.memory_space<vmem>>, %arg7: memref<1x128xf32, #tpu.memory_space<vmem>>, %arg8: memref<16x128xbf16, #tpu.memory_space<vmem>>, %arg9: memref<16x128xf32, #tpu.memory_space<vmem>>, %arg10: memref<16x128xf32, #tpu.memory_space<vmem>>) attributes {dimension_semantics = [#tpu.dimension_semantics<parallel>, #tpu.dimension_semantics<parallel>, #tpu.dimension_semantics<arbitrary>], iteration_bounds = array<i64: 1, 1, 1>, scalar_prefetch = 0 : i64, scratch_operands = 2 : i64, tpu.core_type = #tpu.core_type<tc>, window_params = [{transform_indices = @transform_0, window_bounds = array<i64: 16, 128>}, {transform_indices = @transform_1, window_bounds = array<i64: 128, 128>}, {transform_indices = @transform_2, window_bounds = array<i64: 128, 128>}, {transform_indices = @transform_3, window_bounds = array<i64: 1, 128>}, {transform_indices = @transform_4, window_bounds = array<i64: 1, 128>}, {transform_indices = @transform_5, window_bounds = array<i64: 16, 128>}]} {
    %c0_i32 = arith.constant 0 : i32
    %0 = arith.cmpi eq, %arg2, %c0_i32 : i32
    %1 = arith.extui %0 : i1 to i32
    %c0_i32_0 = arith.constant 0 : i32
    %2 = arith.cmpi ne, %1, %c0_i32_0 : i32
    scf.if %2 {
      %cst_17 = arith.constant 0.000000e+00 : f32
      %17 = vector.broadcast %cst_17 : f32 to vector<16x128xf32>
      %c0_18 = arith.constant 0 : index
      %c0_19 = arith.constant 0 : index
      %18 = vector.load %arg6[%c0_18, %c0_19] : memref<1x128xf32, #tpu.memory_space<vmem>>, vector<1x128xf32>
      %19 = vector.broadcast %18 : vector<1x128xf32> to vector<16x128xf32>
      %20 = arith.addf %17, %19 : vector<16x128xf32>
      %c0_20 = arith.constant 0 : index
      %c0_21 = arith.constant 0 : index
      %21 = vector.load %arg9[%c0_20, %c0_21] : memref<16x128xf32, #tpu.memory_space<vmem>>, vector<16x128xf32>
      tpu.vector_store %arg9[%c0_20, %c0_21], %20 {strides = array<i32>} : memref<16x128xf32, #tpu.memory_space<vmem>>, vector<16x128xf32>,
      %cst_22 = arith.constant 0.000000e+00 : f32
      %22 = vector.broadcast %cst_22 : f32 to vector<16x128xf32>
      %c0_23 = arith.constant 0 : index
      %c0_24 = arith.constant 0 : index
      %23 = vector.load %arg7[%c0_23, %c0_24] : memref<1x128xf32, #tpu.memory_space<vmem>>, vector<1x128xf32>
      %24 = vector.broadcast %23 : vector<1x128xf32> to vector<16x128xf32>
      %25 = arith.addf %22, %24 : vector<16x128xf32>
      %c0_25 = arith.constant 0 : index
      %c0_26 = arith.constant 0 : index
      %26 = vector.load %arg10[%c0_25, %c0_26] : memref<16x128xf32, #tpu.memory_space<vmem>>, vector<16x128xf32>
      tpu.vector_store %arg10[%c0_25, %c0_26], %25 {strides = array<i32>} : memref<16x128xf32, #tpu.memory_space<vmem>>, vector<16x128xf32>,
    } else {
    }
    %c0 = arith.constant 0 : index
    %c0_1 = arith.constant 0 : index
    %3 = vector.load %arg3[%c0, %c0_1] : memref<16x128xbf16, #tpu.memory_space<vmem>>, vector<16x128xbf16>
    %c0_2 = arith.constant 0 : index
    %c0_3 = arith.constant 0 : index
    %4 = vector.load %arg9[%c0_2, %c0_3] : memref<16x128xf32, #tpu.memory_space<vmem>>, vector<16x128xf32>
    %c0_4 = arith.constant 0 : index
    %c0_5 = arith.constant 0 : index
    %5 = vector.load %arg4[%c0_4, %c0_5] : memref<128x128xbf16, #tpu.memory_space<vmem>>, vector<128x128xbf16>
    %cst = arith.constant dense<0.000000e+00> : vector<16x128xf32>
    %6 = tpu.matmul %3, %5, %cst {dimension_numbers = #tpu.dot_dimension_numbers<[1], [0], [0], [1], [0, 0, 1, 1], [], []>} : vector<16x128xbf16>, vector<128x128xbf16>, vector<16x128xf32> -> vector<16x128xf32>
    %7 = arith.addf %4, %6 : vector<16x128xf32>
    %c0_6 = arith.constant 0 : index
    %c0_7 = arith.constant 0 : index
    %8 = vector.load %arg9[%c0_6, %c0_7] : memref<16x128xf32, #tpu.memory_space<vmem>>, vector<16x128xf32>
    tpu.vector_store %arg9[%c0_6, %c0_7], %7 {strides = array<i32>} : memref<16x128xf32, #tpu.memory_space<vmem>>, vector<16x128xf32>,
    %c0_8 = arith.constant 0 : index
    %c0_9 = arith.constant 0 : index
    %9 = vector.load %arg10[%c0_8, %c0_9] : memref<16x128xf32, #tpu.memory_space<vmem>>, vector<16x128xf32>
    %c0_10 = arith.constant 0 : index
    %c0_11 = arith.constant 0 : index
    %10 = vector.load %arg5[%c0_10, %c0_11] : memref<128x128xbf16, #tpu.memory_space<vmem>>, vector<128x128xbf16>
    %cst_12 = arith.constant dense<0.000000e+00> : vector<16x128xf32>
    %11 = tpu.matmul %3, %10, %cst_12 {dimension_numbers = #tpu.dot_dimension_numbers<[1], [0], [0], [1], [0, 0, 1, 1], [], []>} : vector<16x128xbf16>, vector<128x128xbf16>, vector<16x128xf32> -> vector<16x128xf32>
    %12 = arith.addf %9, %11 : vector<16x128xf32>
    %c0_13 = arith.constant 0 : index
    %c0_14 = arith.constant 0 : index
    %13 = vector.load %arg10[%c0_13, %c0_14] : memref<16x128xf32, #tpu.memory_space<vmem>>, vector<16x128xf32>
    tpu.vector_store %arg10[%c0_13, %c0_14], %12 {strides = array<i32>} : memref<16x128xf32, #tpu.memory_space<vmem>>, vector<16x128xf32>,
    %c0_i32_15 = arith.constant 0 : i32
    %14 = arith.cmpi eq, %arg2, %c0_i32_15 : i32
    %15 = arith.extui %14 : i1 to i32
    %c0_i32_16 = arith.constant 0 : i32
    %16 = arith.cmpi ne, %15, %c0_i32_16 : i32
    scf.if %16 {
      %c0_17 = arith.constant 0 : index
      %c0_18 = arith.constant 0 : index
      %17 = vector.load %arg9[%c0_17, %c0_18] : memref<16x128xf32, #tpu.memory_space<vmem>>, vector<16x128xf32>
      %18 = arith.negf %17 : vector<16x128xf32>
      %19 = math.exp %18 : vector<16x128xf32>
      %cst_19 = arith.constant 1.000000e+00 : f32
      %20 = vector.broadcast %cst_19 : f32 to vector<16x128xf32>
      %21 = arith.addf %20, %19 : vector<16x128xf32>
      %22 = arith.divf %20, %21 : vector<16x128xf32>
      %23 = arith.mulf %17, %22 : vector<16x128xf32>
      %c0_20 = arith.constant 0 : index
      %c0_21 = arith.constant 0 : index
      %24 = vector.load %arg10[%c0_20, %c0_21] : memref<16x128xf32, #tpu.memory_space<vmem>>, vector<16x128xf32>
      %25 = arith.mulf %23, %24 : vector<16x128xf32>
      %26 = arith.truncf %25 : vector<16x128xf32> to vector<16x128xbf16>
      %c0_22 = arith.constant 0 : index
      %c0_23 = arith.constant 0 : index
      %27 = vector.load %arg8[%c0_22, %c0_23] : memref<16x128xbf16, #tpu.memory_space<vmem>>, vector<16x128xbf16>
      tpu.vector_store %arg8[%c0_22, %c0_23], %26 {strides = array<i32>} : memref<16x128xbf16, #tpu.memory_space<vmem>>, vector<16x128xbf16>,
    } else {
    }
    return
  }
  func.func @transform_0(%arg0: i32, %arg1: i32, %arg2: i32) -> (i32, i32) {
    %c0_i32 = arith.constant 0 : i32
    return %arg0, %arg2 : i32, i32
  }
  func.func @transform_1(%arg0: i32, %arg1: i32, %arg2: i32) -> (i32, i32) {
    %c0_i32 = arith.constant 0 : i32
    return %arg2, %arg1 : i32, i32
  }
  func.func @transform_2(%arg0: i32, %arg1: i32, %arg2: i32) -> (i32, i32) {
    %c0_i32 = arith.constant 0 : i32
    return %arg2, %arg1 : i32, i32
  }
  func.func @transform_3(%arg0: i32, %arg1: i32, %arg2: i32) -> (i32, i32) {
    %c0_i32 = arith.constant 0 : i32
    %c0_i32_0 = arith.constant 0 : i32
    return %c0_i32, %arg1 : i32, i32
  }
  func.func @transform_4(%arg0: i32, %arg1: i32, %arg2: i32) -> (i32, i32) {
    %c0_i32 = arith.constant 0 : i32
    %c0_i32_0 = arith.constant 0 : i32
    return %c0_i32, %arg1 : i32, i32
  }
  func.func @transform_5(%arg0: i32, %arg1: i32, %arg2: i32) -> (i32, i32) {
    %c0_i32 = arith.constant 0 : i32
    return %arg0, %arg1 : i32, i32
  }
}

</mosaic_0001>

<bundles_post_ra>
// kernel: _lambda_.11
= control target key start
LH: loop header
LB: loop body
LE: loop exit
PB: predicated region body
PF: predicated region fallthrough
CT: control target
= control target key end

     0   :  { %8 = vsyncpa [#allocation4], 0  ;;  %s266_s12 = smov [#allocation3]   ;;  %s303_s0 = inlined_call_operand.vmem [shape: bf16[16,128], index: 0, kind: input, shape index: {}]   ;;  %s304_s1 = inlined_call_operand.hbm [shape: bf16[128,128], index: 1, kind: input, shape index: {}]   ;;  %s305_s2 = inlined_call_operand.vmem [shape: f32[1,128], index: 2, kind: input, shape index: {}]   ;;  %s306_s3 = inlined_call_operand.vmem [shape: bf16[16,128], index: 3, kind: output, shape index: {}]  }
   0x1   :  { %s16_s13 = sshll.u32 %s266_s12, 4  ;;  %s17_s13 = int_to_ptr.vmem [resolvable:$true] %s16_s13 }
   0x2   :  { %s252_s14 = scalar_lea.vmem %s17_s13, 1024  ;;  %p257_p1 = scmp.lt.s32.totalorder %s17_s13, %s17_s13 }
   0x3   :  { %p253_p0 = scmp.ne.s32.totalorder %s17_s13, %s252_s14  ;;  %p258_p2 = scmp.lt.s32.totalorder %s252_s14, %s252_s14 }
   0x5   :  { %p259_p3 = por %p258_p2, %p257_p1 }
   0x7   :  { %p260_p4 = pnand %p259_p3, %p253_p0 }
   0x9   :  { %263 = shalt.err (!%p260_p4)
}
   0xa   :  { %s267_s15 = smov 64   ;;  %s268_s16 = smov 4  }
   0xb   :  { %22 = dma.hbm_to_vmem [thread:$0]  %s304_s1, 1024, %s17_s13, [#allocation4], %s267_s15, %s267_s15, %s268_s16  }
   0xc   :  { %264 = dma.done.wait [#allocation4], 1024  }
   0xd   :  { %265 = vsyncadd [#allocation4], 4294966272  ;;  %v269_v0 = vmov 0.0   ;;  %vm270_vm0 = vmmov 0   ;;  %v235_v1 = vld [vmem:[#allocation3 + $0x38] sm:$0xff]   ;;  %v236_v2 = vld [vmem:[#allocation3 + $0x30] sm:$0xff]  }
   0xe   :  { %210 = vmatprep.subr.bf16.mxu0 %v269_v0  ;;  %226 = vmatprep.mubr.msk.bf16.mxu0 %vm270_vm0, %v269_v0  ;;  %v237_v3 = vld [vmem:[#allocation3 + $0x28] sm:$0xff]   ;;  %v238_v4 = vld [vmem:[#allocation3 + $0x20] sm:$0xff]   ;;  %v239_v5 = vld [vmem:[#allocation3 + $0x18] sm:$0xff]  }
   0xf   :  { %211 = vmatpush3.bf16.msra.mxu0 %v235_v1  ;;  %v240_v6 = vld [vmem:[#allocation3 + $0x10] sm:$0xff]   ;;  %v241_v7 = vld [vmem:[#allocation3 + $0x8] sm:$0xff]   ;;  %v242_v8 = vld [vmem:[#allocation3] sm:$0xff]  }
  0x10   :  { %212 = vmatprep.subr.bf16.mxu0 %v269_v0  ;;  %v243_v9 = vld [vmem:[%s303_s0] sm:$0xff]  }
  0x11   :  { %v182_v11 = vld [vmem:[%s305_s2] ss:$0 sm:$0xff] }
  0x13   :  { %213 = vmatpush3.bf16.msra.mxu0 %v236_v2 }
  0x14   :  { %214 = vmatprep.subr.bf16.mxu0 %v269_v0 }
  0x17   :  { %215 = vmatpush3.bf16.msra.mxu0 %v237_v3 }
  0x18   :  { %216 = vmatprep.subr.bf16.mxu0 %v269_v0 }
  0x1b   :  { %217 = vmatpush3.bf16.msra.mxu0 %v238_v4 }
  0x1c   :  { %218 = vmatprep.subr.bf16.mxu0 %v269_v0 }
  0x1f   :  { %219 = vmatpush3.bf16.msra.mxu0 %v239_v5 }
  0x20   :  { %220 = vmatprep.subr.bf16.mxu0 %v269_v0 }
  0x23   :  { %221 = vmatpush3.bf16.msra.mxu0 %v240_v6 }
  0x24   :  { %222 = vmatprep.subr.bf16.mxu0 %v269_v0 }
  0x27   :  { %223 = vmatpush3.bf16.msra.mxu0 %v241_v7 }
  0x28   :  { %224 = vmatprep.subr.bf16.mxu0 %v269_v0 }
  0x2b   :  { %225 = vmatpush3.bf16.msra.mxu0 %v242_v8 }
  0x2e   :  { %227 = vmatmul.mubr.bf16.vlgmr.msra.gmra.mxu0 %v243_v9 }
  0xee   :  { %v151_v10 = vpop.f32.mrf.mxu0 }
  0xef   :  { %v158_v14 = vadd.f32 %v182_v11, %v151_v10 }
  0xf0   :  { %v228_v12 = vpop.f32.mrf.mxu0 }
  0xf2   :  { %v154_v13 = vpop.f32.mrf.mxu0 }
  0xf3   :  { %v159_v15 = vadd.f32 %v182_v11, %v154_v13 }
  0xf4   :  { %v229_v16 = vpop.f32.mrf.mxu0 }
  0xf5   :  { %v199_v17 = vpack.c.bf16 %v159_v15, %v158_v14 }
  0xf7   :  { %200 = vst [vmem:[%s306_s3] sm:$0xff] %v199_v17  }
  0xf8   :  { %181 = vsyncpa [#allocation4], 1 }

// kernel: _lambda_.12
= control target key start
LH: loop header
LB: loop body
LE: loop exit
PB: predicated region body
PF: predicated region fallthrough
CT: control target
= control target key end

     0   :  { %v226_v0 = vmov 0.0   ;;  %vm227_vm0 = vmmov 0   ;;  %s281_s1 = inlined_call_operand.vmem [shape: bf16[128,128], index: 1, kind: input, shape index: {}]   ;;  %s282_s0 = inlined_call_operand.vmem [shape: bf16[16,128], index: 0, kind: input, shape index: {}]   ;;  %s283_s2 = inlined_call_operand.vmem [shape: f32[1,128], index: 2, kind: input, shape index: {}]   ;;  %s284_s3 = inlined_call_operand.vmem [shape: bf16[16,128], index: 3, kind: output, shape index: {}]  }
   0x1   :  { %195 = vmatprep.subr.bf16.mxu0 %v226_v0  ;;  %v217_v1 = vld [vmem:[%s281_s1 + $0x38] sm:$0xff]   ;;  %211 = vmatprep.mubr.msk.bf16.mxu0 %vm227_vm0, %v226_v0  ;;  %v218_v2 = vld [vmem:[%s281_s1 + $0x30] sm:$0xff]   ;;  %v219_v3 = vld [vmem:[%s281_s1 + $0x28] sm:$0xff]  }
   0x2   :  { %196 = vmatpush3.bf16.msra.mxu0 %v217_v1  ;;  %v220_v4 = vld [vmem:[%s281_s1 + $0x20] sm:$0xff]   ;;  %v221_v5 = vld [vmem:[%s281_s1 + $0x18] sm:$0xff]   ;;  %v222_v6 = vld [vmem:[%s281_s1 + $0x10] sm:$0xff]  }
   0x3   :  { %197 = vmatprep.subr.bf16.mxu0 %v226_v0  ;;  %v223_v7 = vld [vmem:[%s281_s1 + $0x8] sm:$0xff]   ;;  %v224_v8 = vld [vmem:[%s281_s1] sm:$0xff]  }
   0x4   :  { %v225_v9 = vld [vmem:[%s282_s0] sm:$0xff]  }
   0x5   :  { %v167_v11 = vld [vmem:[%s283_s2] ss:$0 sm:$0xff] }
   0x6   :  { %198 = vmatpush3.bf16.msra.mxu0 %v218_v2 }
   0x7   :  { %199 = vmatprep.subr.bf16.mxu0 %v226_v0 }
   0xa   :  { %200 = vmatpush3.bf16.msra.mxu0 %v219_v3 }
   0xb   :  { %201 = vmatprep.subr.bf16.mxu0 %v226_v0 }
   0xe   :  { %202 = vmatpush3.bf16.msra.mxu0 %v220_v4 }
   0xf   :  { %203 = vmatprep.subr.bf16.mxu0 %v226_v0 }
  0x12   :  { %204 = vmatpush3.bf16.msra.mxu0 %v221_v5 }
  0x13   :  { %205 = vmatprep.subr.bf16.mxu0 %v226_v0 }
  0x16   :  { %206 = vmatpush3.bf16.msra.mxu0 %v222_v6 }
  0x17   :  { %207 = vmatprep.subr.bf16.mxu0 %v226_v0 }
  0x1a   :  { %208 = vmatpush3.bf16.msra.mxu0 %v223_v7 }
  0x1b   :  { %209 = vmatprep.subr.bf16.mxu0 %v226_v0 }
  0x1e   :  { %210 = vmatpush3.bf16.msra.mxu0 %v224_v8 }
  0x21   :  { %212 = vmatmul.mubr.bf16.vlgmr.msra.gmra.mxu0 %v225_v9 }
  0xe1   :  { %v137_v10 = vpop.f32.mrf.mxu0 }
  0xe2   :  { %v144_v14 = vadd.f32 %v167_v11, %v137_v10 }
  0xe3   :  { %v213_v12 = vpop.f32.mrf.mxu0 }
  0xe5   :  { %v140_v13 = vpop.f32.mrf.mxu0 }
  0xe6   :  { %v145_v15 = vadd.f32 %v167_v11, %v140_v13 }
  0xe7   :  { %v214_v16 = vpop.f32.mrf.mxu0 }
  0xe8   :  { %v184_v17 = vpack.c.bf16 %v145_v15, %v144_v14 }
  0xea   :  { %185 = vst [vmem:[%s284_s3] sm:$0xff] %v184_v17  }

// kernel: _lambda_.13
= control target key start
LH: loop header
LB: loop body
LE: loop exit
PB: predicated region body
PF: predicated region fallthrough
CT: control target
= control target key end

     0   :  { %v427_v0 = vmov 0.0   ;;  %vm428_vm0 = vmmov 0   ;;  %s519_s1 = inlined_call_operand.vmem [shape: bf16[128,128], index: 1, kind: input, shape index: {}]   ;;  %s520_s2 = inlined_call_operand.vmem [shape: bf16[128,128], index: 2, kind: input, shape index: {}]   ;;  %s521_s0 = inlined_call_operand.vmem [shape: bf16[16,128], index: 0, kind: input, shape index: {}]   ;;  %s522_s3 = inlined_call_operand.vmem [shape: f32[1,128], index: 3, kind: input, shape index: {}]   ;;  %s523_s4 = inlined_call_operand.vmem [shape: f32[1,128], index: 4, kind: input, shape index: {}]   ;;  %s524_s5 = inlined_call_operand.vmem [shape: bf16[16,128], index: 5, kind: output, shape index: {}]  }
   0x1   :  { %360 = vmatprep.subr.bf16.mxu0 %v427_v0  ;;  %v402_v1 = vld [vmem:[%s519_s1 + $0x38] sm:$0xff]   ;;  %380 = vmatprep.subr.bf16.mxu1 %v427_v0  ;;  %v403_v2 = vld [vmem:[%s519_s1 + $0x30] sm:$0xff]   ;;  %v404_v3 = vld [vmem:[%s519_s1 + $0x28] sm:$0xff]  }
   0x2   :  { %376 = vmatprep.mubr.msk.bf16.mxu0 %vm428_vm0, %v427_v0  ;;  %396 = vmatprep.mubr.msk.bf16.mxu1 %vm428_vm0, %v427_v0  ;;  %v410_v4 = vld [vmem:[%s520_s2 + $0x38] sm:$0xff]   ;;  %v405_v5 = vld [vmem:[%s519_s1 + $0x20] sm:$0xff]   ;;  %v412_v6 = vld [vmem:[%s520_s2 + $0x30] sm:$0xff]  }
   0x3   :  { %361 = vmatpush3.bf16.msra.mxu0 %v402_v1  ;;  %381 = vmatpush3.bf16.msra.mxu1 %v410_v4  ;;  %v406_v7 = vld [vmem:[%s519_s1 + $0x18] sm:$0xff]   ;;  %v413_v8 = vld [vmem:[%s520_s2 + $0x28] sm:$0xff]   ;;  %v407_v9 = vld [vmem:[%s519_s1 + $0x10] sm:$0xff]  }
   0x4   :  { %362 = vmatprep.subr.bf16.mxu0 %v427_v0  ;;  %382 = vmatprep.subr.bf16.mxu1 %v427_v0  ;;  %v414_v10 = vld [vmem:[%s520_s2 + $0x20] sm:$0xff]   ;;  %v408_v11 = vld [vmem:[%s519_s1 + $0x8] sm:$0xff]   ;;  %v415_v12 = vld [vmem:[%s520_s2 + $0x18] sm:$0xff]  }
   0x5   :  { %v409_v13 = vld [vmem:[%s519_s1] sm:$0xff]   ;;  %v416_v14 = vld [vmem:[%s520_s2 + $0x10] sm:$0xff]   ;;  %v417_v16 = vld [vmem:[%s520_s2 + $0x8] sm:$0xff]  }
   0x6   :  { %v411_v15 = vld [vmem:[%s521_s0] sm:$0xff]  }
   0x7   :  { %363 = vmatpush3.bf16.msra.mxu0 %v403_v2  ;;  %383 = vmatpush3.bf16.msra.mxu1 %v412_v6  ;;  %v418_v17 = vld [vmem:[%s520_s2] sm:$0xff]  }
   0x8   :  { %364 = vmatprep.subr.bf16.mxu0 %v427_v0  ;;  %384 = vmatprep.subr.bf16.mxu1 %v427_v0  ;;  %v312_v18 = vld [vmem:[%s522_s3] ss:$0 sm:$0xff] }
   0x9   :  { %v313_v36 = vld [vmem:[%s523_s4] ss:$0 sm:$0xff] }
   0xb   :  { %365 = vmatpush3.bf16.msra.mxu0 %v404_v3  ;;  %385 = vmatpush3.bf16.msra.mxu1 %v413_v8 }
   0xc   :  { %366 = vmatprep.subr.bf16.mxu0 %v427_v0  ;;  %386 = vmatprep.subr.bf16.mxu1 %v427_v0 }
   0xf   :  { %367 = vmatpush3.bf16.msra.mxu0 %v405_v5  ;;  %387 = vmatpush3.bf16.msra.mxu1 %v414_v10 }
  0x10   :  { %368 = vmatprep.subr.bf16.mxu0 %v427_v0  ;;  %388 = vmatprep.subr.bf16.mxu1 %v427_v0 }
  0x13   :  { %369 = vmatpush3.bf16.msra.mxu0 %v406_v7  ;;  %389 = vmatpush3.bf16.msra.mxu1 %v415_v12 }
  0x14   :  { %370 = vmatprep.subr.bf16.mxu0 %v427_v0  ;;  %390 = vmatprep.subr.bf16.mxu1 %v427_v0 }
  0x17   :  { %371 = vmatpush3.bf16.msra.mxu0 %v407_v9  ;;  %391 = vmatpush3.bf16.msra.mxu1 %v416_v14 }
  0x18   :  { %372 = vmatprep.subr.bf16.mxu0 %v427_v0  ;;  %392 = vmatprep.subr.bf16.mxu1 %v427_v0 }
  0x1b   :  { %373 = vmatpush3.bf16.msra.mxu0 %v408_v11  ;;  %393 = vmatpush3.bf16.msra.mxu1 %v417_v16 }
  0x1c   :  { %374 = vmatprep.subr.bf16.mxu0 %v427_v0  ;;  %394 = vmatprep.subr.bf16.mxu1 %v427_v0 }
  0x1f   :  { %375 = vmatpush3.bf16.msra.mxu0 %v409_v13  ;;  %395 = vmatpush3.bf16.msra.mxu1 %v418_v17 }
  0x22   :  { %377 = vmatmul.mubr.bf16.vlgmr.msra.gmra.mxu0 %v411_v15  ;;  %397 = vmatmul.mubr.bf16.vlgmr.msra.gmra.mxu1 %v411_v15 }
  0xe2   :  { %v153_v19 = vpop.f32.mrf.mxu0  ;;  %v264_v27 = vpop.f32.mrf.mxu1 }
  0xe3   :  { %v160_v20 = vadd.f32 %v312_v18, %v153_v19  ;;  %v271_v38 = vadd.f32 %v313_v36, %v264_v27 }
  0xe4   :  { %v378_v21 = vpop.f32.mrf.mxu0  ;;  %v398_v28 = vpop.f32.mrf.mxu1 }
  0xe5   :  { %v331_v22 = vmul.f32 -1.442695, %v160_v20 }
  0xe6   :  { %v156_v23 = vpop.f32.mrf.mxu0  ;;  %v267_v29 = vpop.f32.mrf.mxu1 }
  0xe7   :  { %419 = vpow2.f32 %v331_v22  ;;  %v161_v24 = vadd.f32 %v312_v18, %v156_v23  ;;  %v272_v41 = vadd.f32 %v313_v36, %v267_v29 }
  0xe8   :  { %v379_v25 = vpop.f32.mrf.mxu0  ;;  %v399_v30 = vpop.f32.mrf.mxu1 }
  0xe9   :  { %v332_v26 = vmul.f32 -1.442695, %v161_v24 }
  0xeb   :  { %421 = vpow2.f32 %v332_v26 }
  0xf4   :  { %v420_v31 = vpop.eup %419 }
  0xf5   :  { %v286_v32 = vadd.f32 1.0, %v420_v31 }
  0xf7   :  { %423 = vrcp.f32 %v286_v32 }
  0xf8   :  { %v422_v33 = vpop.eup %421 }
  0xf9   :  { %v287_v34 = vadd.f32 1.0, %v422_v33 }
  0xfb   :  { %425 = vrcp.f32 %v287_v34 }
 0x104   :  { %v424_v35 = vpop.eup %423 }
 0x105   :  { %v292_v37 = vmul.f32 %v424_v35, %v160_v20 }
 0x107   :  { %v296_v42 = vmul.f32 %v292_v37, %v271_v38 }
 0x108   :  { %v426_v39 = vpop.eup %425 }
 0x109   :  { %v293_v40 = vmul.f32 %v426_v39, %v161_v24 }
 0x10b   :  { %v297_v43 = vmul.f32 %v293_v40, %v272_v41 }
 0x10d   :  { %v340_v44 = vpack.c.bf16 %v297_v43, %v296_v42 }
 0x10f   :  { %341 = vst [vmem:[%s524_s5] sm:$0xff] %v340_v44  }

</bundles_post_ra>
